<compile_context>
chip_gen: v6e
topology: v6e:2x2x1
jax: 0.10.0
libtpu: 0.0.40
codegen_flags: <defaults>
</compile_context>

<pallas_src>
import functools

import jax
import jax.numpy as jnp
from jax.experimental import pallas as pl
from jax.experimental.pallas import tpu as pltpu


# ---------------------------------------------------------------------------
# Fused kernel: avg-pool + cSE MLP + sSE + combine in one pass over x.
# ---------------------------------------------------------------------------
def _scse_fused_kernel(x_ref, w1_ref, b1_ref, w2t_ref, b2_ref, ws_ref, bs_ref,
                       o_ref, *, inv_hw):
    # x_ref:   (nb, C, HWp)  native dtype, HW on the lane axis (pad = zeros).
    # w1_ref:  (1, C, Cr)    cSE conv1 weights (matmul layout), f32.
    # b1_ref:  (1, 1, Cr)    cSE conv1 bias.
    # w2t_ref: (1, C, Cr)    cSE conv2 weights transposed to (C, Cr).
    # b2_ref:  (1, C, 1)     cSE conv2 bias.
    # ws_ref:  (1, C, 1)     sSE conv weights.
    # bs_ref:  (1,)          sSE bias scalar in SMEM.
    x = x_ref[...].astype(jnp.float32)

    # Global average pool: pad lanes are zero so the sum is exact; divide by
    # the true (unpadded) H*W.
    mean = jnp.sum(x, axis=2, keepdims=True) * inv_hw                       # (nb, C, 1)

    # Tiny 2-layer MLP as VPU broadcast-mul + XLU reduces (no MXU, no
    # in-kernel reshapes / relayouts).
    h = jnp.maximum(
        jnp.sum(mean * w1_ref[...], axis=1, keepdims=True) + b1_ref[...],
        0.0)                                                                 # (nb, 1, Cr)
    cse = jax.nn.sigmoid(
        jnp.sum(h * w2t_ref[...], axis=2, keepdims=True) + b2_ref[...])      # (nb, C, 1)

    # sSE gate: per-pixel channel reduction (VPU mul + sublane reduce).
    sse = jax.nn.sigmoid(
        jnp.sum(x * ws_ref[...], axis=1, keepdims=True) + bs_ref[0])         # (nb, 1, HWp)

    # x*cSE + x*sSE == x * (cSE + sSE): one add + one mul per element.
    o_ref[...] = (x * (cse + sse)).astype(o_ref.dtype)


# ---------------------------------------------------------------------------
# Fallback kernel (sample too large for VMEM): cSE gate precomputed in the
# wrapper, kernel is purely elementwise and HW-tiled.
# ---------------------------------------------------------------------------
def _scse_elementwise_kernel(x_ref, ws_ref, cse_ref, bs_ref, o_ref):
    # x_ref: (nb, C, hw_tile); ws_ref: (1, C, 1); cse_ref: (nb, C, 1) f32;
    # bs_ref: (1,) SMEM.
    x = x_ref[...].astype(jnp.float32)
    sse = jax.nn.sigmoid(
        jnp.sum(x * ws_ref[...], axis=1, keepdims=True) + bs_ref[0])
    o_ref[...] = (x * (cse_ref[...] + sse)).astype(o_ref.dtype)


# ---------------------------------------------------------------------------
# Sizing helpers.
# ---------------------------------------------------------------------------
def _round_up(x, m):
    return ((x + m - 1) // m) * m


def _vmem_limit_bytes():
    """Per-generation scoped-VMEM limit (v5e/v6e: 128 MiB, v7x: 64 MiB physical),
    with headroom for compiler-internal scratch."""
    try:
        cap = int(pltpu.get_tpu_info().vmem_capacity_bytes)
    except Exception:  # pragma: no cover - conservative (v7x-sized) default
        cap = 64 * 1024 * 1024
    return min(int(cap * 0.75), 96 * 1024 * 1024)


def _largest_divisor_leq(n, cap):
    cap = max(1, min(n, cap))
    for d in range(cap, 0, -1):
        if n % d == 0:
            return d
    return 1


def _pick_hw_tile(hwp, cap_elems):
    """Largest multiple-of-128 divisor of hwp that is <= cap_elems (>= 128).
    hwp is always a multiple of 128, so 128 is always valid."""
    best = 128
    t = 128
    while t <= cap_elems:
        if hwp % t == 0:
            best = t
        t += 128
    return best


# ---------------------------------------------------------------------------
# Wrapper
# ---------------------------------------------------------------------------
def scse_attention(x_nchw, w1, b1, w2, b2, ws, bs, *, max_block_bytes=None):
    """SCSE forward.

    x_nchw: (N, C, H, W), any float dtype (kept native in HBM).
    Weights in matmul layout (transposed Conv2d 1x1 weights):
      w1: (C, Cr), b1: (1, Cr), w2: (Cr, C), b2: (1, C), ws: (C, 1), bs: scalar.
    max_block_bytes: optional override of the per-block VMEM budget (testing).
    """
    N, C, H, W = x_nchw.shape
    HW = H * W
    dtype = x_nchw.dtype
    itemsize = jnp.dtype(dtype).itemsize
    Cr = w1.shape[1]

    # VMEM budget: ~4 blocks in flight (double-buffered in + out), 8 MiB cap.
    vmem_limit = _vmem_limit_bytes()
    block_bytes_cap = min(vmem_limit // 8, 8 * 1024 * 1024)
    if max_block_bytes is not None:
        block_bytes_cap = min(block_bytes_cap, int(max_block_bytes))

    # Free view to (N, C, HW); pad HW to a multiple of 128 (lane-dense stores).
    x_flat = x_nchw.reshape(N, C, HW)
    HWp = _round_up(HW, 128)
    x = x_flat if HWp == HW else jnp.pad(x_flat, ((0, 0), (0, 0), (0, HWp - HW)))

    # Parameters in kernel-friendly layouts (tiny; f32; no in-kernel reshapes).
    w1_k = w1.reshape(1, C, Cr).astype(jnp.float32)
    b1_k = b1.reshape(1, 1, Cr).astype(jnp.float32)
    w2t_k = w2.T.reshape(1, C, Cr).astype(jnp.float32)
    b2_k = b2.reshape(1, C, 1).astype(jnp.float32)
    ws_k = ws.reshape(1, C, 1).astype(jnp.float32)
    bs_k = jnp.asarray(bs, jnp.float32).reshape(1)

    sample_bytes = C * HWp * itemsize

    if sample_bytes <= block_bytes_cap:
        # ---------------- Fused single-pass path ----------------
        # Keep >= 2 grid steps when N >= 2 so both v7x TensorCores get work.
        nb_cap = min(max(1, N // 2), max(1, block_bytes_cap // sample_bytes))
        nb = _largest_divisor_leq(N, nb_cap)
        grid = (N // nb,)

        out = pl.pallas_call(
            functools.partial(_scse_fused_kernel, inv_hw=float(1.0 / HW)),
            out_shape=jax.ShapeDtypeStruct((N, C, HWp), dtype),
            grid_spec=pltpu.PrefetchScalarGridSpec(
                num_scalar_prefetch=0,
                grid=grid,
                in_specs=[
                    pl.BlockSpec((nb, C, HWp), lambda i: (i, 0, 0)),
                    pl.BlockSpec((1, C, Cr), lambda i: (0, 0, 0)),
                    pl.BlockSpec((1, 1, Cr), lambda i: (0, 0, 0)),
                    pl.BlockSpec((1, C, Cr), lambda i: (0, 0, 0)),
                    pl.BlockSpec((1, C, 1), lambda i: (0, 0, 0)),
                    pl.BlockSpec((1, C, 1), lambda i: (0, 0, 0)),
                    pl.BlockSpec(memory_space=pltpu.MemorySpace.SMEM),
                ],
                out_specs=pl.BlockSpec((nb, C, HWp), lambda i: (i, 0, 0)),
            ),
            compiler_params=pltpu.CompilerParams(
                dimension_semantics=("parallel",),
                vmem_limit_bytes=vmem_limit,
            ),
        )(x, w1_k, b1_k, w2t_k, b2_k, ws_k, bs_k)
    else:
        # ---------------- Two-stage fallback (very large samples) ----------
        # cSE gate precomputed per sample (one extra read of x, unavoidable
        # when a sample cannot stay resident in VMEM).
        mean = jnp.mean(x_flat, axis=2, dtype=jnp.float32)                    # (N, C)
        h = jnp.maximum(mean @ w1.astype(jnp.float32) + b1.astype(jnp.float32), 0.0)
        cse_gate = jax.nn.sigmoid(
            h @ w2.astype(jnp.float32) + b2.astype(jnp.float32))[:, :, None]  # (N, C, 1)

        hw_cap = max(128, block_bytes_cap // (C * itemsize))
        hw_tile = _pick_hw_tile(HWp, hw_cap)
        nb = _largest_divisor_leq(
            N, max(1, block_bytes_cap // (C * hw_tile * itemsize)))
        grid = (N // nb, HWp // hw_tile)

        out = pl.pallas_call(
            _scse_elementwise_kernel,
            out_shape=jax.ShapeDtypeStruct((N, C, HWp), dtype),
            grid_spec=pltpu.PrefetchScalarGridSpec(
                num_scalar_prefetch=0,
                grid=grid,
                in_specs=[
                    pl.BlockSpec((nb, C, hw_tile), lambda bi, ti: (bi, 0, ti)),
                    pl.BlockSpec((1, C, 1), lambda bi, ti: (0, 0, 0)),
                    pl.BlockSpec((nb, C, 1), lambda bi, ti: (bi, 0, 0)),
                    pl.BlockSpec(memory_space=pltpu.MemorySpace.SMEM),
                ],
                out_specs=pl.BlockSpec((nb, C, hw_tile),
                                       lambda bi, ti: (bi, 0, ti)),
            ),
            compiler_params=pltpu.CompilerParams(
                dimension_semantics=("parallel", "parallel"),
                vmem_limit_bytes=vmem_limit,
            ),
        )(x, ws_k, cse_gate, bs_k)

    if HWp != HW:
        out = out[:, :, :HW]
    return out.reshape(N, C, H, W)


# ---------------------------------------------------------------------------
# Pure-JAX reference (identical semantics) for validation.
# ---------------------------------------------------------------------------
def scse_reference(x_nchw, w1, b1, w2, b2, ws, bs):
    x = x_nchw.astype(jnp.float32)
    mean = jnp.mean(x, axis=(2, 3))                                     # (N, C)
    h = jnp.maximum(mean @ w1 + b1, 0.0)                                # (N, Cr)
    cse = jax.nn.sigmoid(h @ w2 + b2)                                   # (N, C)
    sse = jax.nn.sigmoid(jnp.einsum("nchw,c->nhw", x, ws[:, 0]) + bs)   # (N,H,W)
    return x * cse[:, :, None, None] + x * sse[:, None, :, :]


def _make_params(key, C, Cr):
    k1, kb1, k2, kb2, ks, kbs = jax.random.split(key, 6)
    w1 = jax.random.normal(k1, (C, Cr), dtype=jnp.float32) * 0.1   # cSE conv1: C -> Cr
    b1 = jax.random.normal(kb1, (1, Cr), dtype=jnp.float32) * 0.1
    w2 = jax.random.normal(k2, (Cr, C), dtype=jnp.float32) * 0.1   # cSE conv2: Cr -> C
    b2 = jax.random.normal(kb2, (1, C), dtype=jnp.float32) * 0.1
    ws = jax.random.normal(ks, (C, 1), dtype=jnp.float32) * 0.1    # sSE conv: C -> 1
    bs = jax.random.normal(kbs, (), dtype=jnp.float32) * 0.1       # sSE bias
    return w1, b1, w2, b2, ws, bs


if __name__ == "__main__":
    key = jax.random.PRNGKey(0)
    kp1, kx1, kp2, kx2 = jax.random.split(key, 4)

    # --- Case 1: Attention('scse', in_channels=32, reduction=16), fused path.
    N, C, H, W = 2, 32, 16, 16
    Cr = C // 16
    params = _make_params(kp1, C, Cr)
    x = jax.random.normal(kx1, (N, C, H, W), dtype=jnp.float32)

    out = jax.block_until_ready(scse_attention(x, *params))
    ref = jax.block_until_ready(scse_reference(x, *params))
    assert out.shape == (N, C, H, W)
    assert jnp.max(jnp.abs(out - ref)) < 1e-4, "fused path mismatch vs reference"

    # --- Case 2: non-128-aligned H*W exercises the lane padding path.
    N2, C2, H2, W2 = 2, 8, 6, 6
    Cr2 = C2 // 4
    params2 = _make_params(kp2, C2, Cr2)
    x2 = jax.random.normal(kx2, (N2, C2, H2, W2), dtype=jnp.float32)

    out2 = jax.block_until_ready(scse_attention(x2, *params2))
    ref2 = jax.block_until_ready(scse_reference(x2, *params2))
    assert out2.shape == (N2, C2, H2, W2)
    assert jnp.max(jnp.abs(out2 - ref2)) < 1e-4, "padded path mismatch vs reference"

    # --- Case 3: force the two-stage fallback (tiny VMEM budget) on case 1.
    out3 = jax.block_until_ready(
        scse_attention(x, *params, max_block_bytes=16 * 1024))
    assert jnp.max(jnp.abs(out3 - ref)) < 1e-4, "fallback path mismatch vs reference"

    print("KERNEL_OK")
</pallas_src>

<mosaic_0001>
module attributes {stable_mosaic.version = 11 : i64} {
  func.func @_scse_fused_kernel(%arg0: i32, %arg1: memref<1x32x256xf32, #tpu.memory_space<vmem>>, %arg2: memref<1x32x2xf32, #tpu.memory_space<vmem>>, %arg3: memref<1x1x2xf32, #tpu.memory_space<vmem>>, %arg4: memref<1x32x2xf32, #tpu.memory_space<vmem>>, %arg5: memref<1x32x1xf32, #tpu.memory_space<vmem>>, %arg6: memref<1x32x1xf32, #tpu.memory_space<vmem>>, %arg7: memref<1xf32, #tpu.memory_space<smem>>, %arg8: memref<1x32x256xf32, #tpu.memory_space<vmem>>) attributes {dimension_semantics = [#tpu.dimension_semantics<parallel>], iteration_bounds = array<i64: 2>, scalar_prefetch = 0 : i64, scratch_operands = 0 : i64, tpu.core_type = #tpu.core_type<tc>, window_params = [{transform_indices = @transform_0, window_bounds = array<i64: 1, 32, 256>}, {pipeline_mode = #tpu.pipeline_mode<synchronous>, transform_indices = @transform_1, window_bounds = array<i64: 1, 32, 2>}, {pipeline_mode = #tpu.pipeline_mode<synchronous>, transform_indices = @transform_2, window_bounds = array<i64: 1, 1, 2>}, {pipeline_mode = #tpu.pipeline_mode<synchronous>, transform_indices = @transform_3, window_bounds = array<i64: 1, 32, 2>}, {pipeline_mode = #tpu.pipeline_mode<synchronous>, transform_indices = @transform_4, window_bounds = array<i64: 1, 32, 1>}, {pipeline_mode = #tpu.pipeline_mode<synchronous>, transform_indices = @transform_5, window_bounds = array<i64: 1, 32, 1>}, {transform_indices = @transform_6, window_bounds = array<i64: 1>}, {transform_indices = @transform_7, window_bounds = array<i64: 1, 32, 256>}]} {
    %c0 = arith.constant 0 : index
    %c0_0 = arith.constant 0 : index
    %c0_1 = arith.constant 0 : index
    %0 = vector.load %arg1[%c0, %c0_0, %c0_1] : memref<1x32x256xf32, #tpu.memory_space<vmem>>, vector<1x32x256xf32>
    %cst = arith.constant dense<0.000000e+00> : vector<1x32xf32>
    %1 = vector.multi_reduction <add>, %0, %cst [2] : vector<1x32x256xf32> to vector<1x32xf32>
    %2 = vector.shape_cast %1 : vector<1x32xf32> to vector<1x32x1xf32>
    %cst_2 = arith.constant 3.906250e-03 : f32
    %3 = vector.broadcast %cst_2 : f32 to vector<1x32x1xf32>
    %4 = arith.mulf %2, %3 : vector<1x32x1xf32>
    %c0_3 = arith.constant 0 : index
    %c0_4 = arith.constant 0 : index
    %c0_5 = arith.constant 0 : index
    %5 = vector.load %arg2[%c0_3, %c0_4, %c0_5] : memref<1x32x2xf32, #tpu.memory_space<vmem>>, vector<1x32x2xf32>
    %6 = vector.broadcast %4 : vector<1x32x1xf32> to vector<1x32x2xf32>
    %7 = arith.mulf %6, %5 : vector<1x32x2xf32>
    %cst_6 = arith.constant dense<0.000000e+00> : vector<1x2xf32>
    %8 = vector.multi_reduction <add>, %7, %cst_6 [1] : vector<1x32x2xf32> to vector<1x2xf32>
    %9 = vector.shape_cast %8 : vector<1x2xf32> to vector<1x1x2xf32>
    %c0_7 = arith.constant 0 : index
    %c0_8 = arith.constant 0 : index
    %c0_9 = arith.constant 0 : index
    %10 = vector.load %arg3[%c0_7, %c0_8, %c0_9] : memref<1x1x2xf32, #tpu.memory_space<vmem>>, vector<1x1x2xf32>
    %11 = arith.addf %9, %10 : vector<1x1x2xf32>
    %cst_10 = arith.constant 0.000000e+00 : f32
    %12 = vector.broadcast %cst_10 : f32 to vector<1x1x2xf32>
    %13 = arith.maximumf %11, %12 : vector<1x1x2xf32>
    %c0_11 = arith.constant 0 : index
    %c0_12 = arith.constant 0 : index
    %c0_13 = arith.constant 0 : index
    %14 = vector.load %arg4[%c0_11, %c0_12, %c0_13] : memref<1x32x2xf32, #tpu.memory_space<vmem>>, vector<1x32x2xf32>
    %15 = vector.broadcast %13 : vector<1x1x2xf32> to vector<1x32x2xf32>
    %16 = arith.mulf %15, %14 : vector<1x32x2xf32>
    %cst_14 = arith.constant dense<0.000000e+00> : vector<1x32xf32>
    %17 = vector.multi_reduction <add>, %16, %cst_14 [2] : vector<1x32x2xf32> to vector<1x32xf32>
    %18 = vector.shape_cast %17 : vector<1x32xf32> to vector<1x32x1xf32>
    %c0_15 = arith.constant 0 : index
    %c0_16 = arith.constant 0 : index
    %c0_17 = arith.constant 0 : index
    %19 = vector.load %arg5[%c0_15, %c0_16, %c0_17] : memref<1x32x1xf32, #tpu.memory_space<vmem>>, vector<1x32x1xf32>
    %20 = arith.addf %18, %19 : vector<1x32x1xf32>
    %21 = arith.negf %20 : vector<1x32x1xf32>
    %22 = math.exp %21 : vector<1x32x1xf32>
    %cst_18 = arith.constant 1.000000e+00 : f32
    %23 = vector.broadcast %cst_18 : f32 to vector<1x32x1xf32>
    %24 = arith.addf %23, %22 : vector<1x32x1xf32>
    %25 = arith.divf %23, %24 : vector<1x32x1xf32>
    %c0_19 = arith.constant 0 : index
    %c0_20 = arith.constant 0 : index
    %c0_21 = arith.constant 0 : index
    %26 = vector.load %arg6[%c0_19, %c0_20, %c0_21] : memref<1x32x1xf32, #tpu.memory_space<vmem>>, vector<1x32x1xf32>
    %27 = vector.broadcast %26 : vector<1x32x1xf32> to vector<1x32x256xf32>
    %28 = arith.mulf %0, %27 : vector<1x32x256xf32>
    %cst_22 = arith.constant dense<0.000000e+00> : vector<1x256xf32>
    %29 = vector.multi_reduction <add>, %28, %cst_22 [1] : vector<1x32x256xf32> to vector<1x256xf32>
    %30 = vector.shape_cast %29 : vector<1x256xf32> to vector<1x1x256xf32>
    %c0_23 = arith.constant 0 : index
    %31 = memref.load %arg7[%c0_23] : memref<1xf32, #tpu.memory_space<smem>>
    %32 = vector.broadcast %31 : f32 to vector<1x1x256xf32>
    %33 = arith.addf %30, %32 : vector<1x1x256xf32>
    %34 = arith.negf %33 : vector<1x1x256xf32>
    %35 = math.exp %34 : vector<1x1x256xf32>
    %cst_24 = arith.constant 1.000000e+00 : f32
    %36 = vector.broadcast %cst_24 : f32 to vector<1x1x256xf32>
    %37 = arith.addf %36, %35 : vector<1x1x256xf32>
    %38 = arith.divf %36, %37 : vector<1x1x256xf32>
    %39 = vector.broadcast %25 : vector<1x32x1xf32> to vector<1x32x256xf32>
    %40 = vector.broadcast %38 : vector<1x1x256xf32> to vector<1x32x256xf32>
    %41 = arith.addf %39, %40 : vector<1x32x256xf32>
    %42 = arith.mulf %0, %41 : vector<1x32x256xf32>
    %c0_25 = arith.constant 0 : index
    %c0_26 = arith.constant 0 : index
    %c0_27 = arith.constant 0 : index
    %43 = vector.load %arg8[%c0_25, %c0_26, %c0_27] : memref<1x32x256xf32, #tpu.memory_space<vmem>>, vector<1x32x256xf32>
    tpu.vector_store %arg8[%c0_25, %c0_26, %c0_27], %42 {strides = array<i32>} : memref<1x32x256xf32, #tpu.memory_space<vmem>>, vector<1x32x256xf32>,
    return
  }
  func.func @transform_0(%arg0: i32) -> (i32, i32, i32) {
    %c0_i32 = arith.constant 0 : i32
    %c0_i32_0 = arith.constant 0 : i32
    %c0_i32_1 = arith.constant 0 : i32
    return %arg0, %c0_i32, %c0_i32_0 : i32, i32, i32
  }
  func.func @transform_1(%arg0: i32) -> (i32, i32, i32) {
    %c0_i32 = arith.constant 0 : i32
    %c0_i32_0 = arith.constant 0 : i32
    %c0_i32_1 = arith.constant 0 : i32
    %c0_i32_2 = arith.constant 0 : i32
    return %c0_i32, %c0_i32_0, %c0_i32_1 : i32, i32, i32
  }
  func.func @transform_2(%arg0: i32) -> (i32, i32, i32) {
    %c0_i32 = arith.constant 0 : i32
    %c0_i32_0 = arith.constant 0 : i32
    %c0_i32_1 = arith.constant 0 : i32
    %c0_i32_2 = arith.constant 0 : i32
    return %c0_i32, %c0_i32_0, %c0_i32_1 : i32, i32, i32
  }
  func.func @transform_3(%arg0: i32) -> (i32, i32, i32) {
    %c0_i32 = arith.constant 0 : i32
    %c0_i32_0 = arith.constant 0 : i32
    %c0_i32_1 = arith.constant 0 : i32
    %c0_i32_2 = arith.constant 0 : i32
    return %c0_i32, %c0_i32_0, %c0_i32_1 : i32, i32, i32
  }
  func.func @transform_4(%arg0: i32) -> (i32, i32, i32) {
    %c0_i32 = arith.constant 0 : i32
    %c0_i32_0 = arith.constant 0 : i32
    %c0_i32_1 = arith.constant 0 : i32
    %c0_i32_2 = arith.constant 0 : i32
    return %c0_i32, %c0_i32_0, %c0_i32_1 : i32, i32, i32
  }
  func.func @transform_5(%arg0: i32) -> (i32, i32, i32) {
    %c0_i32 = arith.constant 0 : i32
    %c0_i32_0 = arith.constant 0 : i32
    %c0_i32_1 = arith.constant 0 : i32
    %c0_i32_2 = arith.constant 0 : i32
    return %c0_i32, %c0_i32_0, %c0_i32_1 : i32, i32, i32
  }
  func.func @transform_6(%arg0: i32) -> i32 {
    %c0_i32 = arith.constant 0 : i32
    %c0_i32_0 = arith.constant 0 : i32
    return %c0_i32 : i32
  }
  func.func @transform_7(%arg0: i32) -> (i32, i32, i32) {
    %c0_i32 = arith.constant 0 : i32
    %c0_i32_0 = arith.constant 0 : i32
    %c0_i32_1 = arith.constant 0 : i32
    return %arg0, %c0_i32, %c0_i32_0 : i32, i32, i32
  }
}

</mosaic_0001>

<bundles_post_ra>
// kernel: tpu_custom_call.1
= control target key start
LH: loop header
LB: loop body
LE: loop exit
PB: predicated region body
PF: predicated region fallthrough
CT: control target
= control target key end

     0   :  { %s971_s0 = inlined_call_operand.vmem [shape: f32[2,32,256], index: 0, kind: input, shape index: {}]   ;;  %s972_s1 = inlined_call_operand.vmem [shape: f32[1,32,2], index: 1, kind: input, shape index: {}]   ;;  %s973_s2 = inlined_call_operand.vmem [shape: f32[1,1,2], index: 2, kind: input, shape index: {}]   ;;  %s974_s3 = inlined_call_operand.vmem [shape: f32[1,32,2], index: 3, kind: input, shape index: {}]   ;;  %s975_s4 = inlined_call_operand.vmem [shape: f32[1,32,1], index: 4, kind: input, shape index: {}]   ;;  %s976_s5 = inlined_call_operand.vmem [shape: f32[1,32,1], index: 5, kind: input, shape index: {}]   ;;  %s977_s6 = inlined_call_operand.<no memory space> [shape: f32[1], index: 6, kind: input, shape index: {}]   ;;  %s978_s7 = inlined_call_operand.hbm [shape: f32[2,32,256], index: 7, kind: output, shape index: {}]  }
   0x1   :  { %12 = sst [smem:[#allocation2]] %s977_s6 }
   0x2   :  { %13 = vsyncpa [#allocation4], 0 }
   0x3   :  { %15 = vsyncpa [#allocation4 + $0x1], 0  ;;  %s766_s26 = smov 0   ;;  %s768_s27 = smov 0  }
   0x4   :  { %s770_s28 = smov 0   ;;  %s772_s29 = smov 0  }
   0x5 LB: > { %s787_s6 = sadd.s32 4294967295, %s717_s29   ;;  %s569_s30 = sadd.s32 4294967294, %s717_s29   ;;  %s717_s29 = sphi %s772_s29, %s984_s29   ;;  %s713_s28 = sphi %s770_s28, %s983_s28   ;;  %s709_s27 = sphi %s768_s27, %s982_s27   ;;  %s705_s26 = sphi %s766_s26, %s981_s26  }
   0x6   : > { %s791_s8 = sadd.s32 1, %s717_s29   ;;  %s180_s9 = sadd.s32 1, %s713_s28 }
   0x7   : > { %s177_s10 = ssub.s32 %s717_s29, %s791_s8  ;;  %p190_p0 = scmp.ne.s32.totalorder %s713_s28, %s709_s27 }
   0x8   : > { %p178_p1 = scmp.eq.s32.totalorder %s177_s10, 0  ;;  %p191_p2 = scmp.eq.s32.totalorder %s787_s6, 1 }
   0x9   : > { %p196_p3 = scmp.ne.s32.totalorder %s709_s27, %s705_s26  ;;  %p197_p4 = scmp.eq.s32.totalorder %s569_s30, 1 }
   0xa   : > { %s802_s11 = scalar_select %p178_p1, %s713_s28, %s180_s9  }
   0xb   : > { %p804_p5 = por %p191_p2, %p190_p0  ;;  %p808_p6 = por %p197_p4, %p196_p3 }
   0xc   : > { %p572_p7 = scmp.ge.s32.totalorder %s717_s29, 1  ;;  %p241_p8 = scmp.lt.s32.totalorder %s717_s29, 3 }
   0xe   : > { %p242_p9 = pnand %p572_p7, %p241_p8 }
   0xf   : > { %p273_p10 = scmp.lt.s32.totalorder (!%p242_p9), %s787_s6, 1  ;;  %s433_s23 = sld [smem:[#allocation2]] (!%p242_p9) }
  0x10   : > { %245 = sbr.rel (%p242_p9) target bundleno = 529 (0x211), region = 48  ;;  %s270_s24 = sand.u32 (!%p242_p9), 1, %s709_s27  }
  0x11   : > { %s573_s25 = sshll.u32 (!%p242_p9), %s270_s24, 6  ;;  %s588_s9 = sshll.u32 (!%p242_p9), %s787_s6, 10 }
  0x12   : > { %s272_s30 = scalar_lea.vmem (!%p242_p9), [#allocation3], %s573_s25  ;;  %s923_s16 = scalar_lea.hbm (!%p242_p9), %s978_s7, %s588_s9 }
  0x13   : > { %s507_s10 = sshll.u32 (!%p242_p9), %s272_s30, 4  ;;  %s925_s10 = int_to_ptr.vmem [resolvable:$true] %s507_s10 }
  0x14   : > { %s657_s17 = scalar_lea.vmem (!%p242_p9), %s925_s10, 1024 }
  0x15   : > { %s274_s14 = scalar_select %p273_p10, %s787_s6, 1  ;;  %v719_v12 = vmov 0   ;;  %v302_v16 = vld [vmem:[%s972_s1] sm:$0xff]  ;;  %v304_v18 = vld [vmem:[%s972_s1 + $0x10] sm:$0xff]  ;;  %v303_v19 = vld [vmem:[%s972_s1 + $0x8] sm:$0xff]  ;;  %vm310_vm0 = vcmask 15360   ;;  %v331_v39 = vlaneseq }
  0x16   : > { %632 = vset.pattern.permute.xlu1 %v719_v12  ;;  %631 = vset.pattern.permute.xlu0 %v719_v12  ;;  %v305_v23 = vld [vmem:[%s972_s1 + $0x18] sm:$0xff]  ;;  %v324_v43 = vld [vmem:[%s973_s2] sm:$0x1]  ;;  %v328_v48 = vld [vmem:[%s974_s3 + $0x8] sm:$0xff]  ;;  %s931_s6 = scalar_lea.sflag [#allocation4], %s270_s24  ;;  %p658_p11 = scmp.ne.s32.totalorder %s925_s10, %s657_s17 }
  0x17   : > { %s587_s15 = sshll.u32 %s274_s14, 6  ;;  %v332_v42 = vshrl.u32 %v331_v39, 7  ;;  %v327_v49 = vld [vmem:[%s974_s3] sm:$0xff]  ;;  %v330_v51 = vld [vmem:[%s974_s3 + $0x18] sm:$0xff]  ;;  %v329_v52 = vld [vmem:[%s974_s3 + $0x10] sm:$0xff] }
  0x18   : > { %s277_s18 = scalar_lea.vmem %s971_s0, %s587_s15  ;;  %v384_v61 = vld [vmem:[%s976_s5 + $0x8] sm:$0xff]  ;;  %v385_v62 = vld [vmem:[%s976_s5 + $0x10] sm:$0xff]  ;;  %v383_v63 = vld [vmem:[%s976_s5] sm:$0xff]  ;;  %p659_p12 = pnand %p658_p11, %p804_p5 }
  0x19   : > { %v819_v0 = vld [vmem:[%s277_s18] sm:$0xff]  ;;  %v821_v1 = vld [vmem:[%s277_s18 + $0x8] sm:$0xff]  ;;  %v829_v5 = vld [vmem:[%s277_s18 + $0x10] sm:$0xff]  ;;  %v333_v46 = vsub.s32 0, %v332_v42 }
  0x1a   : > { %v823_v2 = vld [vmem:[%s277_s18 + $0x20] sm:$0xff]  ;;  %v286_v3 = vadd.f32 %v821_v1, %v819_v0  ;;  %v827_v4 = vld [vmem:[%s277_s18 + $0x28] sm:$0xff]  ;;  %v831_v6 = vld [vmem:[%s277_s18 + $0x18] sm:$0xff]  ;;  %p660_p13 = pneg %p659_p12 }
  0x1b   : > { %v292_v7 = vadd.f32 %v827_v4, %v823_v2  ;;  %v835_v8 = vld [vmem:[%s277_s18 + $0x30] sm:$0xff]  ;;  %v837_v9 = vld [vmem:[%s277_s18 + $0x38] sm:$0xff]  ;;  %v289_v10 = vadd.f32 %v831_v6, %v829_v5  ;;  %s720_s18 = smov [#allocation3]  }
  0x1c   : > { %287 = vadd.xlane.f32.xlu0 %v286_v3  ;;  %v295_v11 = vadd.f32 %v837_v9, %v835_v8  ;;  %v386_v3 = vld [vmem:[%s976_s5 + $0x18] sm:$0xff]  ;;  %s661_s19 = sshll.u32 %s720_s18, 4  ;;  %s662_s19 = int_to_ptr.vmem [resolvable:$false] %s661_s19 }
  0x1d   : > { %293 = vadd.xlane.f32.xlu1 %v292_v7  ;;  %v352_v7 = vld [vmem:[%s975_s4 + $0x8] sm:$0xff]  ;;  %s663_s20 = scalar_lea.vmem %s662_s19, 2048  ;;  %p664_p0 = scmp.lt.s32.totalorder %s925_s10, %s662_s19 }
  0x1e   : > { %p665_p1 = scmp.lt.s32.totalorder %s663_s20, %s657_s17 }
  0x20   : > { %290 = vadd.xlane.f32.xlu0 %v289_v10  ;;  %v351_v10 = vld [vmem:[%s975_s4] sm:$0xff]  ;;  %p666_p2 = por %p665_p1, %p664_p0 }
  0x21   : > { %296 = vadd.xlane.f32.xlu1 %v295_v11 }
  0x22   : > { %p667_p3 = pnand %p666_p2, %p660_p13 }
  0xa5   : > { %v288_v13 = vpop.xlane.xlu0 %287 }
  0xa6   : > { %v298_v14 = vmul.f32 0.00390625, %v288_v13  ;;  %v294_v15 = vpop.xlane.xlu1 %293 }
  0xa7   : > { %v300_v17 = vmul.f32 0.00390625, %v294_v15  ;;  %v353_v15 = vld [vmem:[%s975_s4 + $0x10] sm:$0xff] }
  0xa8   : > { %v306_v21 = vmul.f32 %v302_v16, %v298_v14 }
  0xa9   : > { %v291_v20 = vpop.xlane.xlu0 %290  ;;  %v308_v26 = vmul.f32 %v304_v18, %v300_v17  ;;  %v354_v18 = vld [vmem:[%s975_s4 + $0x18] sm:$0xff] }
  0xaa   : > { %v299_v22 = vmul.f32 0.00390625, %v291_v20  ;;  %v297_v24 = vpop.xlane.xlu1 %296  ;;  %v311_v29 = vsel %vm310_vm0, %v306_v21, 0.0 }
  0xab   : > { %v301_v25 = vmul.f32 0.00390625, %v297_v24  ;;  %v314_v32 = vsel %vm310_vm0, %v308_v26, 0.0 }
  0xac   : > { %v307_v27 = vmul.f32 %v303_v19, %v299_v22 }
  0xad   : > { %v309_v28 = vmul.f32 %v305_v23, %v301_v25 }
  0xae   : > { %v312_v30 = vsel %vm310_vm0, %v307_v27, 0.0 }
  0xaf   : > { %v313_v31 = vadd.f32 %v312_v30, %v311_v29  ;;  %v316_v33 = vsel %vm310_vm0, %v309_v28, 0.0 }
  0xb1   : > { %v315_v34 = vadd.f32 %v314_v32, %v313_v31 }
  0xb3   : > { %v317_v35 = vadd.f32 %v316_v33, %v315_v34 }
  0xb5   : > { %v318_v36 = vrot.slane %v317_v35, 4 }
  0xb7   : > { %v319_v37 = vadd.f32 %v318_v36, %v317_v35 }
  0xb9   : > { %v320_v38 = vrot.slane %v319_v37, 2 }
  0xbb   : > { %v321_v40 = vadd.f32 %v320_v38, %v319_v37 }
  0xbd   : > { %v322_v41 = vrot.slane %v321_v40, 1 }
  0xbf   : > { %v323_v44 = vadd.f32 %v322_v41, %v321_v40 }
  0xc1   : > { %v325_v45 = vadd.f32 %v324_v43, %v323_v44 }
  0xc3   : > { %v326_v47 = vmax.f32 %v325_v45, 0.0 }
  0xc5   : > { %v334_v50 = vrot.slane %v326_v47, %v333_v46 }
  0xc7   : > { %v336_v53 = vmul.f32 %v334_v50, %v328_v48  ;;  %v335_v54 = vmul.f32 %v334_v50, %v327_v49  ;;  %v338_v57 = vmul.f32 %v334_v50, %v330_v51  ;;  %v337_v58 = vmul.f32 %v334_v50, %v329_v52 }
  0xc9   : > { %v342_v55 = vsel %vm310_vm0, %v336_v53, 0.0  ;;  %v339_v56 = vsel %vm310_vm0, %v335_v54, 0.0  ;;  %v348_v59 = vsel %vm310_vm0, %v338_v57, 0.0  ;;  %v345_v60 = vsel %vm310_vm0, %v337_v58, 0.0 }
  0xca   : > { %343 = vadd.xlane.f32.xlu1 %v342_v55  ;;  %340 = vadd.xlane.f32.xlu0 %v339_v56 }
  0xce   : > { %349 = vadd.xlane.f32.xlu1 %v348_v59  ;;  %346 = vadd.xlane.f32.xlu0 %v345_v60 }
  0xdf   : > { %394 = vperm.xlu1 %632, %v384_v61  }
  0xe3   : > { %399 = vperm.xlu1 %632, %v385_v62  }
  0xe4   : > { %389 = vperm.xlu0 %631, %v383_v63  }
  0xe7   : > { %404 = vperm.xlu1 %632, %v386_v3  }
 0x153   : > { %v344_v11 = vpop.xlane.xlu1 %343  ;;  %v341_v12 = vpop.xlane.xlu0 %340 }
 0x154   : > { %v356_v13 = vadd.f32 %v352_v7, %v344_v11  ;;  %v355_v14 = vadd.f32 %v351_v10, %v341_v12  ;;  %v434_v10 = vstv %s433_s23 }
 0x156   : > { %v577_v16 = vmul.f32 -1.442695, %v356_v13  ;;  %v576_v17 = vmul.f32 -1.442695, %v355_v14 }
 0x157   : > { %v350_v19 = vpop.xlane.xlu1 %349  ;;  %v347_v20 = vpop.xlane.xlu0 %346 }
 0x158   : > { %633 = vpow2.f32 %v577_v16  ;;  %v357_v21 = vadd.f32 %v353_v15, %v347_v20  ;;  %v358_v22 = vadd.f32 %v354_v18, %v350_v19 }
 0x159   : > { %635 = vpow2.f32 %v576_v17 }
 0x15a   : > { %v578_v23 = vmul.f32 -1.442695, %v357_v21  ;;  %v579_v24 = vmul.f32 -1.442695, %v358_v22 }
 0x15b   : > { %v395_v37 = vpop.permute.xlu1 %394 }
 0x15c   : > { %637 = vpow2.f32 %v578_v23  ;;  %v409_v40 = vmul.f32 %v395_v37, %v829_v5  ;;  %v410_v42 = vmul.f32 %v395_v37, %v831_v6 }
 0x15d   : > { %639 = vpow2.f32 %v579_v24 }
 0x15f   : > { %v390_v38 = vpop.permute.xlu0 %389  ;;  %v400_v39 = vpop.permute.xlu1 %399 }
 0x160   : > { %v407_v41 = vmul.f32 %v390_v38, %v819_v0  ;;  %v408_v43 = vmul.f32 %v390_v38, %v821_v1  ;;  %v411_v44 = vmul.f32 %v400_v39, %v823_v2  ;;  %v412_v46 = vmul.f32 %v400_v39, %v827_v4 }
 0x162   : > { %v415_v45 = vadd.f32 %v409_v40, %v407_v41  ;;  %v424_v47 = vadd.f32 %v410_v42, %v408_v43 }
 0x163   : > { %v405_v48 = vpop.permute.xlu1 %404 }
 0x164   : > { %v416_v49 = vadd.f32 %v415_v45, %v411_v44  ;;  %v413_v50 = vmul.f32 %v405_v48, %v835_v8  ;;  %v425_v51 = vadd.f32 %v424_v47, %v412_v46  ;;  %v414_v52 = vmul.f32 %v405_v48, %v837_v9 }
 0x165   : > { %v634_v25 = vpop.eup %633 }
 0x166   : > { %v636_v26 = vpop.eup %635  ;;  %v372_v28 = vadd.f32 1.0, %v634_v25  ;;  %v417_v53 = vadd.f32 %v416_v49, %v413_v50  ;;  %v426_v54 = vadd.f32 %v425_v51, %v414_v52 }
 0x167   : > { %v371_v27 = vadd.f32 1.0, %v636_v26 }
 0x168   : > { %v418_v55 = vrot.slane %v417_v53, 4  ;;  %v427_v56 = vrot.slane %v426_v54, 4 }
 0x169   : > { %641 = vrcp.f32 %v371_v27  ;;  %v638_v29 = vpop.eup %637 }
 0x16a   : > { %643 = vrcp.f32 %v372_v28  ;;  %v373_v30 = vadd.f32 1.0, %v638_v29  ;;  %v640_v31 = vpop.eup %639  ;;  %v419_v57 = vadd.f32 %v418_v55, %v417_v53  ;;  %v428_v58 = vadd.f32 %v427_v56, %v426_v54 }
 0x16b   : > { %v374_v32 = vadd.f32 1.0, %v640_v31 }
 0x16c   : > { %645 = vrcp.f32 %v373_v30  ;;  %v420_v59 = vrot.slane %v419_v57, 2  ;;  %v429_v60 = vrot.slane %v428_v58, 2 }
 0x16d   : > { %647 = vrcp.f32 %v374_v32 }
 0x16e   : > { %v421_v61 = vadd.f32 %v420_v59, %v419_v57  ;;  %v430_v62 = vadd.f32 %v429_v60, %v428_v58 }
 0x170   : > { %v422_v63 = vrot.slane %v421_v61, 1  ;;  %v431_v3 = vrot.slane %v430_v62, 1 }
 0x172   : > { %v423_v7 = vadd.f32 %v422_v63, %v421_v61  ;;  %v432_v11 = vadd.f32 %v431_v3, %v430_v62 }
 0x174   : > { %v435_v12 = vadd.f32 %v434_v10, %v423_v7  ;;  %v436_v13 = vadd.f32 %v434_v10, %v432_v11 }
 0x176   : > { %v642_v33 = vpop.eup %641  ;;  %v580_v14 = vmul.f32 -1.442695, %v435_v12  ;;  %v581_v15 = vmul.f32 -1.442695, %v436_v13 }
 0x177   : > { %451 = vperm.xlu1 %632, %v642_v33   ;;  %v644_v34 = vpop.eup %643 }
 0x178   : > { %649 = vpow2.f32 %v580_v14 }
 0x179   : > { %v646_v35 = vpop.eup %645  ;;  %651 = vpow2.f32 %v581_v15 }
 0x17a   : > { %v648_v36 = vpop.eup %647 }
 0x17b   : > { %456 = vperm.xlu1 %632, %v644_v34  }
 0x17f   : > { %461 = vperm.xlu1 %632, %v646_v35  }
 0x183   : > { %466 = vperm.xlu1 %632, %v648_v36  }
 0x185   : > { %v650_v16 = vpop.eup %649 }
 0x186   : > { %v652_v17 = vpop.eup %651  ;;  %v443_v18 = vadd.f32 1.0, %v650_v16 }
 0x187   : > { %v444_v19 = vadd.f32 1.0, %v652_v17 }
 0x188   : > { %653 = vrcp.f32 %v443_v18 }
 0x189   : > { %655 = vrcp.f32 %v444_v19 }
 0x195   : > { %v654_v20 = vpop.eup %653 }
 0x196   : > { %v656_v21 = vpop.eup %655 }
 0x1f2   : > { %v452_v22 = vpop.permute.xlu1 %451 }
 0x1f3   : > { %v469_v23 = vadd.f32 %v654_v20, %v452_v22  ;;  %v470_v24 = vadd.f32 %v656_v21, %v452_v22 }
 0x1f5   : > { %v477_v25 = vmul.f32 %v469_v23, %v819_v0  ;;  %v478_v26 = vmul.f32 %v470_v24, %v821_v1 }
 0x1f6   : > { %v457_v27 = vpop.permute.xlu1 %456 }
 0x1f7   : > { %485 = vst [vmem:[%s272_s30] sm:$0xff] %v477_v25  ;;  %486 = vst [vmem:[%s272_s30 + $0x8] sm:$0xff] %v478_v26  ;;  %v471_v28 = vadd.f32 %v654_v20, %v457_v27  ;;  %v472_v29 = vadd.f32 %v656_v21, %v457_v27 }
 0x1f9   : > { %v479_v30 = vmul.f32 %v471_v28, %v829_v5  ;;  %v480_v31 = vmul.f32 %v472_v29, %v831_v6 }
 0x1fa   : > { %v462_v32 = vpop.permute.xlu1 %461 }
 0x1fb   : > { %487 = vst [vmem:[%s272_s30 + $0x10] sm:$0xff] %v479_v30  ;;  %488 = vst [vmem:[%s272_s30 + $0x18] sm:$0xff] %v480_v31  ;;  %v473_v33 = vadd.f32 %v654_v20, %v462_v32  ;;  %v474_v34 = vadd.f32 %v656_v21, %v462_v32 }
 0x1fd   : > { %v481_v0 = vmul.f32 %v473_v33, %v823_v2  ;;  %v482_v1 = vmul.f32 %v474_v34, %v827_v4 }
 0x1fe   : > { %v467_v35 = vpop.permute.xlu1 %466 }
 0x1ff   : > { %489 = vst [vmem:[%s272_s30 + $0x20] sm:$0xff] %v481_v0  ;;  %490 = vst [vmem:[%s272_s30 + $0x28] sm:$0xff] %v482_v1  ;;  %v475_v36 = vadd.f32 %v654_v20, %v467_v35  ;;  %v476_v5 = vadd.f32 %v656_v21, %v467_v35 }
 0x201   : > { %v483_v2 = vmul.f32 %v475_v36, %v835_v8  ;;  %v484_v4 = vmul.f32 %v476_v5, %v837_v9 }
 0x203   : > { %491 = vst [vmem:[%s272_s30 + $0x30] sm:$0xff] %v483_v2  ;;  %492 = vst [vmem:[%s272_s30 + $0x38] sm:$0xff] %v484_v4 }
 0x204   : > { %670 = shalt.err (!%p667_p3)
}
 0x205   : > { %s671_s21 = scalar_lea.hbm %s923_s16, 1024  ;;  %s675_s24 = scalar_lea.hbm %s978_s7, 2048 }
 0x206   : > { %p672_p4 = scmp.ne.s32.totalorder %s923_s16, %s671_s21  ;;  %p676_p9 = scmp.lt.s32.totalorder %s923_s16, %s978_s7 }
 0x207   : > { %p677_p10 = scmp.lt.s32.totalorder %s675_s24, %s671_s21 }
 0x208   : > { %p673_p7 = pnand %p672_p4, %p804_p5 }
 0x209   : > { %p678_p11 = por %p677_p10, %p676_p9 }
 0x20a   : > { %p674_p8 = pneg %p673_p7 }
 0x20c   : > { %p679_p12 = pnand %p678_p11, %p674_p8 }
 0x20e   : > { %682 = shalt.err (!%p679_p12)
}
 0x20f   : > { %s721_s9 = smov 256   ;;  %s722_s14 = smov 16  }
 0x210   : > { %589 = dma.vmem_to_hbm [thread:$0]  (%p804_p5), %s925_s10, 1024, %s923_s16, %s931_s6, %s721_s9, %s721_s9, %s722_s14  }
 0x211 PF: > { %p595_p13 = scmp.ge.s32.totalorder %s717_s29, 2  ;;  %s522_s15 = sand.u32 1, %s705_s26  }
 0x212   : > { %s523_s17 = scalar_lea.sflag [#allocation4], %s522_s15 }
 0x213   : > { %p592_p0 = pnand %p595_p13, %p808_p6 }
 0x215   : > { %p593_p1 = pneg %p592_p0 }
 0x217   : > { %700 = dma.done.wait (%p593_p1), %s523_s17, 1024  }
 0x218   : > { %702 = vsyncadd (%p593_p1), %s523_s17, 4294966272  ;;  %p18_p2 = scmp.ge.s32.totalorder %s791_s8, 4   ;;  %s981_s26 = smov %s709_s27 }
 0x219   : > { %s982_s27 = smov %s713_s28  ;;  %s983_s28 = smov %s802_s11 }
 0x21a   : > { %s984_s29 = smov %s791_s8  ;;  %20 = sbr.rel (!%p18_p2) target bundleno = 5 (0x5), region = 83 }
 0x21f   :  { %528 = vsyncpa [#allocation4], 1 }
 0x220   :  { %530 = vsyncpa [#allocation4 + $0x1], 1 }

</bundles_post_ra>
